<compile_context>
chip_gen: v7x
topology: tpu7x:2x2x1
jax: 0.10.0
libtpu: 0.0.40
codegen_flags: <defaults>
</compile_context>

<pallas_src>
import functools

import numpy as np
import jax
import jax.numpy as jnp
from jax.experimental import pallas as pl
from jax.experimental.pallas import tpu as pltpu

PAD_INDEX = 0  # SpecialTokens.pad_index


def _round_up(x, m):
    return ((x + m - 1) // m) * m


def _pick_batch_tile(batch, per_batch_bytes, budget=6 << 20, cap=256):
    """Largest multiple-of-8 batch tile dividing `batch` that fits the budget.

    Keeps >= 2 grid steps when the batch allows it so dimension_semantics=
    ("parallel", ...) can shard across both TensorCores on v7x.
    """
    if batch % 8 != 0:
        return batch                      # ragged batch: one grid step
    limit = max(8, min(cap, budget // max(per_batch_bytes, 1)))
    if batch >= 16:
        limit = min(limit, batch // 2)
    best = 8
    for tb in range(8, batch + 1, 8):
        if batch % tb == 0 and tb <= limit:
            best = tb
    return best


# ----------------------------------------------------------------------------
# Kernel bodies
# ----------------------------------------------------------------------------
def _conv_head(x2_bf16, w_ref, bconv_ref, mask_ref, fcw_ref, fcb_ref,
               logits_ref, probs_ref, *, k_max, tb, l_pad):
    """x2_bf16: (tb*l_pad, D) bf16 -> write logits/probs (tb, C)."""
    M = tb * l_pad
    NF = w_ref.shape[-1]

    # Per-tap matmuls; tap-j output rotated back by j sublanes (XLU) so that
    # acc[b, t] = sum_j x[b, t+j] @ W_tap[j]  (valid conv; invalid / wrapped
    # time positions are removed by the additive -1e30 mask before pooling).
    acc = jax.lax.dot_general(
        x2_bf16, w_ref[0],
        dimension_numbers=(((1,), (0,)), ((), ())),
        preferred_element_type=jnp.float32)                    # (M, NF) f32
    for j in range(1, k_max):
        y = jax.lax.dot_general(
            x2_bf16, w_ref[j],
            dimension_numbers=(((1,), (0,)), ((), ())),
            preferred_element_type=jnp.float32)
        acc = acc + pltpu.roll(y, shift=M - j, axis=0)         # == jnp.roll(y, -j, 0)

    conv = acc.reshape(tb, l_pad, NF) + mask_ref[...][None, :, :]   # f32 mask
    pooled = jnp.max(conv, axis=1)                             # (tb, NF)
    feat = jnp.maximum(pooled + bconv_ref[...], 0.0)           # bias+ReLU post-pool

    logits = jnp.dot(feat.astype(jnp.bfloat16), fcw_ref[...],
                     preferred_element_type=jnp.float32) + fcb_ref[...]
    m = jnp.max(logits, axis=-1, keepdims=True)
    e = jnp.exp(logits - m)
    probs = e * pl.reciprocal(jnp.sum(e, axis=-1, keepdims=True), approx=True)
    logits_ref[...] = logits
    probs_ref[...] = probs


def _fused_id_kernel(x_ref, w_ref, bconv_ref, mask_ref, fcw_ref, fcb_ref,
                     logits_ref, probs_ref, *, k_max, tb, l_pad):
    _conv_head(x_ref[...], w_ref, bconv_ref, mask_ref, fcw_ref, fcb_ref,
               logits_ref, probs_ref, k_max=k_max, tb=tb, l_pad=l_pad)


def _fused_soft_kernel(xs_ref, emb_ref, w_ref, bconv_ref, mask_ref, fcw_ref,
                       fcb_ref, logits_ref, probs_ref, acc_ref,
                       *, k_max, tb, l_pad):
    v = pl.program_id(1)

    @pl.when(v == 0)
    def _():
        acc_ref[...] = jnp.zeros_like(acc_ref)

    # Vocab-tiled soft-embedding: accumulate (tb*l_pad, Vt) x (Vt, D) into f32.
    acc_ref[...] += jax.lax.dot_general(
        xs_ref[...], emb_ref[...],
        dimension_numbers=(((1,), (0,)), ((), ())),
        preferred_element_type=jnp.float32)

    @pl.when(v == pl.num_programs(1) - 1)
    def _():
        _conv_head(acc_ref[...].astype(jnp.bfloat16), w_ref, bconv_ref,
                   mask_ref, fcw_ref, fcb_ref, logits_ref, probs_ref,
                   k_max=k_max, tb=tb, l_pad=l_pad)


# ----------------------------------------------------------------------------
# pallas_call wrappers
# ----------------------------------------------------------------------------
def _id_forward(x2, wconv, bconv, mask, fcw, fcb, *, batch, tb, l_pad, k_max):
    M = tb * l_pad
    D = x2.shape[-1]
    NF = wconv.shape[-1]
    C = fcw.shape[-1]
    kern = functools.partial(_fused_id_kernel, k_max=k_max, tb=tb, l_pad=l_pad)
    return pl.pallas_call(
        kern,
        out_shape=(jax.ShapeDtypeStruct((batch, C), jnp.float32),
                   jax.ShapeDtypeStruct((batch, C), jnp.float32)),
        grid=(batch // tb,),
        in_specs=[
            pl.BlockSpec((M, D), lambda b: (b, 0)),
            pl.BlockSpec((k_max, D, NF), lambda b: (0, 0, 0)),
            pl.BlockSpec((1, NF), lambda b: (0, 0)),
            pl.BlockSpec((l_pad, NF), lambda b: (0, 0)),
            pl.BlockSpec((NF, C), lambda b: (0, 0)),
            pl.BlockSpec((1, C), lambda b: (0, 0)),
        ],
        out_specs=(pl.BlockSpec((tb, C), lambda b: (b, 0)),
                   pl.BlockSpec((tb, C), lambda b: (b, 0))),
        compiler_params=pltpu.CompilerParams(
            dimension_semantics=("parallel",),
            vmem_limit_bytes=32 * 1024 * 1024),
    )(x2, wconv, bconv, mask, fcw, fcb)


def _soft_forward(xs2, emb, wconv, bconv, mask, fcw, fcb, *,
                  batch, tb, l_pad, vt, k_max):
    M = tb * l_pad
    V_pad, D = emb.shape
    NF = wconv.shape[-1]
    C = fcw.shape[-1]
    nv = V_pad // vt
    kern = functools.partial(_fused_soft_kernel, k_max=k_max, tb=tb, l_pad=l_pad)
    return pl.pallas_call(
        kern,
        out_shape=(jax.ShapeDtypeStruct((batch, C), jnp.float32),
                   jax.ShapeDtypeStruct((batch, C), jnp.float32)),
        grid=(batch // tb, nv),
        in_specs=[
            pl.BlockSpec((M, vt), lambda b, v: (b, v)),
            pl.BlockSpec((vt, D), lambda b, v: (v, 0)),
            pl.BlockSpec((k_max, D, NF), lambda b, v: (0, 0, 0)),
            pl.BlockSpec((1, NF), lambda b, v: (0, 0)),
            pl.BlockSpec((l_pad, NF), lambda b, v: (0, 0)),
            pl.BlockSpec((NF, C), lambda b, v: (0, 0)),
            pl.BlockSpec((1, C), lambda b, v: (0, 0)),
        ],
        out_specs=(pl.BlockSpec((tb, C), lambda b, v: (b, 0)),
                   pl.BlockSpec((tb, C), lambda b, v: (b, 0))),
        scratch_shapes=[pltpu.VMEM((M, D), jnp.float32)],
        compiler_params=pltpu.CompilerParams(
            dimension_semantics=("parallel", "arbitrary"),
            vmem_limit_bytes=32 * 1024 * 1024),
    )(xs2, emb, wconv, bconv, mask, fcw, fcb)


# ----------------------------------------------------------------------------
# Model
# ----------------------------------------------------------------------------
def _build_neg_mask(kernel_sizes, seq_len, l_pad, num_filters):
    # Position t is valid for a branch with kernel size k iff t < L - k + 1
    # ("valid" conv range).  Built host-side (tiny), kept in f32.
    valid = np.concatenate(
        [np.full((num_filters,), max(seq_len - k + 1, 0)) for k in kernel_sizes])
    mask = np.where(np.arange(l_pad)[:, None] < valid[None, :], 0.0, -1e30)
    return jnp.asarray(mask, jnp.float32)


def init_params(key, vocab_size, embedding_dim, kernel_sizes, num_filters,
                num_classes):
    n = len(kernel_sizes)
    k_max = max(kernel_sizes)
    keys = jax.random.split(key, 3 + n)
    emb = 0.1 * jax.random.normal(keys[0], (vocab_size, embedding_dim),
                                  jnp.float32)
    emb = emb.at[PAD_INDEX].set(0.0)                     # padding_idx row = 0

    # Per-tap packed conv weight: taps[j][:, i*F:(i+1)*F] is branch i's j-th
    # tap (zeros for j >= k_i).  Shape (k_max, D, n*F).
    cols = []
    for i, k in enumerate(kernel_sizes):
        w = 0.1 * jax.random.normal(
            keys[1 + i], (k, embedding_dim, num_filters), jnp.float32)
        pad = jnp.zeros((k_max - k, embedding_dim, num_filters), jnp.float32)
        cols.append(jnp.concatenate([w, pad], axis=0))
    conv_w_taps = jnp.concatenate(cols, axis=-1)
    conv_b = 0.1 * jax.random.normal(keys[-2], (1, n * num_filters), jnp.float32)
    fc_w = 0.1 * jax.random.normal(keys[-1], (n * num_filters, num_classes),
                                   jnp.float32)
    fc_b = 0.1 * jax.random.normal(keys[-2], (1, num_classes), jnp.float32)
    return {
        "embedding": emb.astype(jnp.bfloat16),           # matmul operands bf16
        "conv_w_taps": conv_w_taps.astype(jnp.bfloat16),
        "conv_b": conv_b,                                # biases / mask stay f32
        "fc_w": fc_w.astype(jnp.bfloat16),
        "fc_b": fc_b,
        "kernel_sizes": tuple(kernel_sizes),
        "num_filters": num_filters,
    }


def cnn_classifier_forward(params, input_seq):
    ks = params["kernel_sizes"]
    F = params["num_filters"]
    NF = len(ks) * F
    k_max = max(ks)
    emb = params["embedding"]
    V, D = emb.shape
    conv_w, conv_b = params["conv_w_taps"], params["conv_b"]
    fc_w, fc_b = params["fc_w"], params["fc_b"]

    B, L = input_seq.shape[0], input_seq.shape[1]
    L_pad = _round_up(max(L, 16), 16)     # mult of 16: bf16 tile-legal blocks
    neg_mask = _build_neg_mask(ks, L, L_pad, F)

    if input_seq.ndim == 2:
        # Integer token ids -> embedding lookup (data-dependent gather in JAX).
        x = jnp.take(emb, input_seq, axis=0)                       # (B, L, D)
        x = jnp.pad(x, ((0, 0), (0, L_pad - L), (0, 0)))
        x2 = x.reshape(B * L_pad, D)                               # 2D MXU slab
        tb = _pick_batch_tile(B, L_pad * (2 * D * 2 + 3 * NF * 4), cap=256)
        return _id_forward(x2, conv_w, conv_b, neg_mask, fc_w, fc_b,
                           batch=B, tb=tb, l_pad=L_pad, k_max=k_max)

    # Soft / one-hot tokens: the embedding einsum is fused into the kernel with
    # a V-tiled "arbitrary" reduction axis.
    vt = 512 if V >= 512 else _round_up(V, 128)
    V_pad = _round_up(V, vt)
    xs = jnp.pad(input_seq.astype(jnp.float32),
                 ((0, 0), (0, L_pad - L), (0, V_pad - V))).astype(jnp.bfloat16)
    xs2 = xs.reshape(B * L_pad, V_pad)
    emb_p = jnp.pad(emb, ((0, V_pad - V), (0, 0)))
    tb = _pick_batch_tile(B, L_pad * (2 * vt * 2 + D * 4 + 3 * NF * 4), cap=64)
    return _soft_forward(xs2, emb_p, conv_w, conv_b, neg_mask, fc_w, fc_b,
                         batch=B, tb=tb, l_pad=L_pad, vt=vt, k_max=k_max)


# ----------------------------------------------------------------------------
# Pure-JAX reference (PyTorch op order: conv+bias -> ReLU -> max-over-time)
# ----------------------------------------------------------------------------
def reference_forward(params, input_seq):
    emb = params["embedding"].astype(jnp.float32)
    if input_seq.ndim == 2:
        x = jnp.take(emb, input_seq, axis=0)
    else:
        x = jnp.einsum("ijk,kl->ijl", input_seq.astype(jnp.float32), emb,
                       precision="highest")
    F = params["num_filters"]
    taps = params["conv_w_taps"].astype(jnp.float32)
    L = x.shape[1]
    outs = []
    for i, k in enumerate(params["kernel_sizes"]):
        t_out = L - k + 1
        conv = 0.0
        for j in range(k):
            conv = conv + jnp.einsum("btd,df->btf", x[:, j:j + t_out, :],
                                     taps[j, :, i * F:(i + 1) * F],
                                     precision="highest")
        act = jax.nn.relu(conv + params["conv_b"][0, i * F:(i + 1) * F])
        outs.append(jnp.max(act, axis=1))
    feat = jnp.concatenate(outs, axis=-1)
    logits = jnp.dot(feat, params["fc_w"].astype(jnp.float32),
                     precision="highest") + params["fc_b"]
    return logits, jax.nn.softmax(logits, axis=-1)


if __name__ == "__main__":
    vocab_size = 50
    max_length = 16
    embedding_dim = 32
    kernel_sizes = (3, 4, 5)
    num_filters = 16
    num_classes = 2
    batch = 2

    key = jax.random.PRNGKey(0)
    k_param, k_data = jax.random.split(key)
    params = init_params(k_param, vocab_size, embedding_dim, kernel_sizes,
                         num_filters, num_classes)
    input_seq = jax.random.randint(k_data, (batch, max_length), 0, vocab_size,
                                   dtype=jnp.int32)

    # Integer-id path.
    logits, probs = cnn_classifier_forward(params, input_seq)
    jax.block_until_ready((logits, probs))

    # Soft (one-hot) path must agree with the id path.
    onehot = jax.nn.one_hot(input_seq, vocab_size, dtype=jnp.float32)
    logits_s, probs_s = cnn_classifier_forward(params, onehot)
    jax.block_until_ready((logits_s, probs_s))

    ref_logits, ref_probs = reference_forward(params, input_seq)

    assert logits.shape == (batch, num_classes)
    assert probs.shape == (batch, num_classes)
    assert bool(jnp.allclose(jnp.sum(probs, axis=-1), 1.0, atol=5e-3))
    assert bool(jnp.allclose(logits, ref_logits, atol=2e-3)), (logits, ref_logits)
    assert bool(jnp.allclose(probs, ref_probs, atol=5e-3))
    assert bool(jnp.allclose(logits, logits_s, atol=2e-3))
    assert bool(jnp.allclose(probs, probs_s, atol=5e-3))
    print("KERNEL_OK")
</pallas_src>

<mosaic_0001>
module attributes {stable_mosaic.version = 11 : i64} {
  func.func @_fused_id_kernel(%arg0: i32, %arg1: memref<32x32xbf16, #tpu.memory_space<vmem>>, %arg2: memref<5x32x48xbf16, #tpu.memory_space<vmem>>, %arg3: memref<1x48xf32, #tpu.memory_space<vmem>>, %arg4: memref<16x48xf32, #tpu.memory_space<vmem>>, %arg5: memref<48x2xbf16, #tpu.memory_space<vmem>>, %arg6: memref<1x2xf32, #tpu.memory_space<vmem>>, %arg7: memref<2x2xf32, #tpu.memory_space<vmem>>, %arg8: memref<2x2xf32, #tpu.memory_space<vmem>>) attributes {dimension_semantics = [#tpu.dimension_semantics<parallel>], iteration_bounds = array<i64: 1>, scalar_prefetch = 0 : i64, scratch_operands = 0 : i64, tpu.core_type = #tpu.core_type<tc>, window_params = [{transform_indices = @transform_0, window_bounds = array<i64: 32, 32>}, {pipeline_mode = #tpu.pipeline_mode<synchronous>, transform_indices = @transform_1, window_bounds = array<i64: 5, 32, 48>}, {pipeline_mode = #tpu.pipeline_mode<synchronous>, transform_indices = @transform_2, window_bounds = array<i64: 1, 48>}, {pipeline_mode = #tpu.pipeline_mode<synchronous>, transform_indices = @transform_3, window_bounds = array<i64: 16, 48>}, {pipeline_mode = #tpu.pipeline_mode<synchronous>, transform_indices = @transform_4, window_bounds = array<i64: 48, 2>}, {pipeline_mode = #tpu.pipeline_mode<synchronous>, transform_indices = @transform_5, window_bounds = array<i64: 1, 2>}, {transform_indices = @transform_6, window_bounds = array<i64: 2, 2>}, {transform_indices = @transform_7, window_bounds = array<i64: 2, 2>}]} {
    %c0 = arith.constant 0 : index
    %c0_0 = arith.constant 0 : index
    %0 = vector.load %arg1[%c0, %c0_0] : memref<32x32xbf16, #tpu.memory_space<vmem>>, vector<32x32xbf16>
    %c0_1 = arith.constant 0 : index
    %c0_2 = arith.constant 0 : index
    %c0_3 = arith.constant 0 : index
    %1 = vector.load %arg2[%c0_1, %c0_2, %c0_3] : memref<5x32x48xbf16, #tpu.memory_space<vmem>>, vector<1x32x48xbf16>
    %2 = vector.shape_cast %1 : vector<1x32x48xbf16> to vector<32x48xbf16>
    %cst = arith.constant dense<0.000000e+00> : vector<32x48xf32>
    %3 = tpu.matmul %0, %2, %cst {dimension_numbers = #tpu.dot_dimension_numbers<[1], [0], [0], [1], [0, 0, 1, 1], [], []>} : vector<32x32xbf16>, vector<32x48xbf16>, vector<32x48xf32> -> vector<32x48xf32>
    %c1 = arith.constant 1 : index
    %c0_4 = arith.constant 0 : index
    %c0_5 = arith.constant 0 : index
    %4 = vector.load %arg2[%c1, %c0_4, %c0_5] : memref<5x32x48xbf16, #tpu.memory_space<vmem>>, vector<1x32x48xbf16>
    %5 = vector.shape_cast %4 : vector<1x32x48xbf16> to vector<32x48xbf16>
    %cst_6 = arith.constant dense<0.000000e+00> : vector<32x48xf32>
    %6 = tpu.matmul %0, %5, %cst_6 {dimension_numbers = #tpu.dot_dimension_numbers<[1], [0], [0], [1], [0, 0, 1, 1], [], []>} : vector<32x32xbf16>, vector<32x48xbf16>, vector<32x48xf32> -> vector<32x48xf32>
    %c31_i32 = arith.constant 31 : i32
    %7 = tpu.dynamic_rotate %6 by %c31_i32 dim 0 : vector<32x48xf32>, i32 -> vector<32x48xf32>
    %8 = arith.addf %3, %7 : vector<32x48xf32>
    %c2 = arith.constant 2 : index
    %c0_7 = arith.constant 0 : index
    %c0_8 = arith.constant 0 : index
    %9 = vector.load %arg2[%c2, %c0_7, %c0_8] : memref<5x32x48xbf16, #tpu.memory_space<vmem>>, vector<1x32x48xbf16>
    %10 = vector.shape_cast %9 : vector<1x32x48xbf16> to vector<32x48xbf16>
    %cst_9 = arith.constant dense<0.000000e+00> : vector<32x48xf32>
    %11 = tpu.matmul %0, %10, %cst_9 {dimension_numbers = #tpu.dot_dimension_numbers<[1], [0], [0], [1], [0, 0, 1, 1], [], []>} : vector<32x32xbf16>, vector<32x48xbf16>, vector<32x48xf32> -> vector<32x48xf32>
    %c30_i32 = arith.constant 30 : i32
    %12 = tpu.dynamic_rotate %11 by %c30_i32 dim 0 : vector<32x48xf32>, i32 -> vector<32x48xf32>
    %13 = arith.addf %8, %12 : vector<32x48xf32>
    %c3 = arith.constant 3 : index
    %c0_10 = arith.constant 0 : index
    %c0_11 = arith.constant 0 : index
    %14 = vector.load %arg2[%c3, %c0_10, %c0_11] : memref<5x32x48xbf16, #tpu.memory_space<vmem>>, vector<1x32x48xbf16>
    %15 = vector.shape_cast %14 : vector<1x32x48xbf16> to vector<32x48xbf16>
    %cst_12 = arith.constant dense<0.000000e+00> : vector<32x48xf32>
    %16 = tpu.matmul %0, %15, %cst_12 {dimension_numbers = #tpu.dot_dimension_numbers<[1], [0], [0], [1], [0, 0, 1, 1], [], []>} : vector<32x32xbf16>, vector<32x48xbf16>, vector<32x48xf32> -> vector<32x48xf32>
    %c29_i32 = arith.constant 29 : i32
    %17 = tpu.dynamic_rotate %16 by %c29_i32 dim 0 : vector<32x48xf32>, i32 -> vector<32x48xf32>
    %18 = arith.addf %13, %17 : vector<32x48xf32>
    %c4 = arith.constant 4 : index
    %c0_13 = arith.constant 0 : index
    %c0_14 = arith.constant 0 : index
    %19 = vector.load %arg2[%c4, %c0_13, %c0_14] : memref<5x32x48xbf16, #tpu.memory_space<vmem>>, vector<1x32x48xbf16>
    %20 = vector.shape_cast %19 : vector<1x32x48xbf16> to vector<32x48xbf16>
    %cst_15 = arith.constant dense<0.000000e+00> : vector<32x48xf32>
    %21 = tpu.matmul %0, %20, %cst_15 {dimension_numbers = #tpu.dot_dimension_numbers<[1], [0], [0], [1], [0, 0, 1, 1], [], []>} : vector<32x32xbf16>, vector<32x48xbf16>, vector<32x48xf32> -> vector<32x48xf32>
    %c28_i32 = arith.constant 28 : i32
    %22 = tpu.dynamic_rotate %21 by %c28_i32 dim 0 : vector<32x48xf32>, i32 -> vector<32x48xf32>
    %23 = arith.addf %18, %22 : vector<32x48xf32>
    %24 = vector.shape_cast %23 : vector<32x48xf32> to vector<2x16x48xf32>
    %c0_16 = arith.constant 0 : index
    %c0_17 = arith.constant 0 : index
    %25 = vector.load %arg4[%c0_16, %c0_17] : memref<16x48xf32, #tpu.memory_space<vmem>>, vector<16x48xf32>
    %26 = vector.shape_cast %25 : vector<16x48xf32> to vector<1x16x48xf32>
    %27 = vector.broadcast %26 : vector<1x16x48xf32> to vector<2x16x48xf32>
    %28 = arith.addf %24, %27 : vector<2x16x48xf32>
    %cst_18 = arith.constant dense<0xFF800000> : vector<2x48xf32>
    %29 = vector.multi_reduction <maximumf>, %28, %cst_18 [1] : vector<2x16x48xf32> to vector<2x48xf32>
    %c0_19 = arith.constant 0 : index
    %c0_20 = arith.constant 0 : index
    %30 = vector.load %arg3[%c0_19, %c0_20] : memref<1x48xf32, #tpu.memory_space<vmem>>, vector<1x48xf32>
    %31 = vector.broadcast %30 : vector<1x48xf32> to vector<2x48xf32>
    %32 = arith.addf %29, %31 : vector<2x48xf32>
    %cst_21 = arith.constant 0.000000e+00 : f32
    %33 = vector.broadcast %cst_21 : f32 to vector<2x48xf32>
    %34 = arith.maximumf %32, %33 : vector<2x48xf32>
    %35 = arith.truncf %34 : vector<2x48xf32> to vector<2x48xbf16>
    %c0_22 = arith.constant 0 : index
    %c0_23 = arith.constant 0 : index
    %36 = vector.load %arg5[%c0_22, %c0_23] : memref<48x2xbf16, #tpu.memory_space<vmem>>, vector<48x2xbf16>
    %cst_24 = arith.constant dense<0.000000e+00> : vector<2x2xf32>
    %37 = tpu.matmul %35, %36, %cst_24 {dimension_numbers = #tpu.dot_dimension_numbers<[1], [0], [0], [1], [0, 0, 1, 1], [], []>} : vector<2x48xbf16>, vector<48x2xbf16>, vector<2x2xf32> -> vector<2x2xf32>
    %c0_25 = arith.constant 0 : index
    %c0_26 = arith.constant 0 : index
    %38 = vector.load %arg6[%c0_25, %c0_26] : memref<1x2xf32, #tpu.memory_space<vmem>>, vector<1x2xf32>
    %39 = vector.broadcast %38 : vector<1x2xf32> to vector<2x2xf32>
    %40 = arith.addf %37, %39 : vector<2x2xf32>
    %cst_27 = arith.constant dense<0xFF800000> : vector<2xf32>
    %41 = vector.multi_reduction <maximumf>, %40, %cst_27 [1] : vector<2x2xf32> to vector<2xf32>
    %42 = vector.shape_cast %41 : vector<2xf32> to vector<2x1xf32>
    %43 = vector.broadcast %42 : vector<2x1xf32> to vector<2x2xf32>
    %44 = arith.subf %40, %43 : vector<2x2xf32>
    %45 = math.exp %44 : vector<2x2xf32>
    %cst_28 = arith.constant dense<0.000000e+00> : vector<2xf32>
    %46 = vector.multi_reduction <add>, %45, %cst_28 [1] : vector<2x2xf32> to vector<2xf32>
    %47 = vector.shape_cast %46 : vector<2xf32> to vector<2x1xf32>
    %48 = tpu.reciprocal %47 {approx = true} : vector<2x1xf32> -> vector<2x1xf32>
    %49 = vector.broadcast %48 : vector<2x1xf32> to vector<2x2xf32>
    %50 = arith.mulf %45, %49 : vector<2x2xf32>
    %c0_29 = arith.constant 0 : index
    %c0_30 = arith.constant 0 : index
    %51 = vector.load %arg7[%c0_29, %c0_30] : memref<2x2xf32, #tpu.memory_space<vmem>>, vector<2x2xf32>
    tpu.vector_store %arg7[%c0_29, %c0_30], %40 {strides = array<i32>} : memref<2x2xf32, #tpu.memory_space<vmem>>, vector<2x2xf32>,
    %c0_31 = arith.constant 0 : index
    %c0_32 = arith.constant 0 : index
    %52 = vector.load %arg8[%c0_31, %c0_32] : memref<2x2xf32, #tpu.memory_space<vmem>>, vector<2x2xf32>
    tpu.vector_store %arg8[%c0_31, %c0_32], %50 {strides = array<i32>} : memref<2x2xf32, #tpu.memory_space<vmem>>, vector<2x2xf32>,
    return
  }
  func.func @transform_0(%arg0: i32) -> (i32, i32) {
    %c0_i32 = arith.constant 0 : i32
    %c0_i32_0 = arith.constant 0 : i32
    return %arg0, %c0_i32 : i32, i32
  }
  func.func @transform_1(%arg0: i32) -> (i32, i32, i32) {
    %c0_i32 = arith.constant 0 : i32
    %c0_i32_0 = arith.constant 0 : i32
    %c0_i32_1 = arith.constant 0 : i32
    %c0_i32_2 = arith.constant 0 : i32
    return %c0_i32, %c0_i32_0, %c0_i32_1 : i32, i32, i32
  }
  func.func @transform_2(%arg0: i32) -> (i32, i32) {
    %c0_i32 = arith.constant 0 : i32
    %c0_i32_0 = arith.constant 0 : i32
    %c0_i32_1 = arith.constant 0 : i32
    return %c0_i32, %c0_i32_0 : i32, i32
  }
  func.func @transform_3(%arg0: i32) -> (i32, i32) {
    %c0_i32 = arith.constant 0 : i32
    %c0_i32_0 = arith.constant 0 : i32
    %c0_i32_1 = arith.constant 0 : i32
    return %c0_i32, %c0_i32_0 : i32, i32
  }
  func.func @transform_4(%arg0: i32) -> (i32, i32) {
    %c0_i32 = arith.constant 0 : i32
    %c0_i32_0 = arith.constant 0 : i32
    %c0_i32_1 = arith.constant 0 : i32
    return %c0_i32, %c0_i32_0 : i32, i32
  }
  func.func @transform_5(%arg0: i32) -> (i32, i32) {
    %c0_i32 = arith.constant 0 : i32
    %c0_i32_0 = arith.constant 0 : i32
    %c0_i32_1 = arith.constant 0 : i32
    return %c0_i32, %c0_i32_0 : i32, i32
  }
  func.func @transform_6(%arg0: i32) -> (i32, i32) {
    %c0_i32 = arith.constant 0 : i32
    %c0_i32_0 = arith.constant 0 : i32
    return %arg0, %c0_i32 : i32, i32
  }
  func.func @transform_7(%arg0: i32) -> (i32, i32) {
    %c0_i32 = arith.constant 0 : i32
    %c0_i32_0 = arith.constant 0 : i32
    return %arg0, %c0_i32 : i32, i32
  }
}

</mosaic_0001>

<bundles_post_ra>
// kernel: tpu_custom_call.1
= control target key start
LH: loop header
LB: loop body
LE: loop exit
PB: predicated region body
PF: predicated region fallthrough
CT: control target
= control target key end

     0   :  { %13 = vsyncpa [#allocation3], 0  ;;  %s1004_s0 = inlined_call_operand.vmem [shape: bf16[32,32], index: 0, kind: input, shape index: {}]   ;;  %s1005_s1 = inlined_call_operand.hbm [shape: bf16[5,32,48], index: 1, kind: input, shape index: {}]   ;;  %s1006_s2 = inlined_call_operand.hbm [shape: f32[1,48], index: 2, kind: input, shape index: {}]   ;;  %s1007_s3 = inlined_call_operand.vmem [shape: f32[16,48], index: 3, kind: input, shape index: {}]   ;;  %s1008_s4 = inlined_call_operand.vmem [shape: bf16[48,2], index: 4, kind: input, shape index: {}]   ;;  %s1009_s5 = inlined_call_operand.vmem [shape: f32[1,2], index: 5, kind: input, shape index: {}]   ;;  %s1010_s6 = inlined_call_operand.hbm [shape: f32[2,2], index: 6, kind: output, shape index: {0}]   ;;  %s1011_s7 = inlined_call_operand.hbm [shape: f32[2,2], index: 7, kind: output, shape index: {1}]  }
   0x1   :  { %14 = vsyncpa [#allocation6], 0 }
   0x2   :  { %15 = vsyncpa [#allocation4], 0 }
   0x3   :  { %16 = vsyncpa [#allocation9], 0  ;;  %s843_s24 = smov [#allocation2]   ;;  %s747_s28 = scalar_lea.hbm %s1005_s1, 1280 }
   0x4   :  { %s24_s25 = sshll.u32 %s843_s24, 4  ;;  %p748_p0 = scmp.ne.s32.totalorder %s1005_s1, %s747_s28  ;;  %s25_s25 = int_to_ptr.vmem [resolvable:$true] %s24_s25 }
   0x5   :  { %p751_p1 = scmp.lt.u32.totalorder %s747_s28, %s1005_s1 }
   0x7   :  { %p753_p2 = pnand %p751_p1, %p748_p0 }
   0x9   :  { %756 = shalt.err (!%p753_p2)
}
   0xa   :  { %s757_s10 = scalar_lea.vmem %s25_s25, 1280  ;;  %p762_p4 = scmp.lt.s32.totalorder %s25_s25, %s25_s25 }
   0xb   :  { %p758_p3 = scmp.ne.s32.totalorder %s25_s25, %s757_s10  ;;  %p763_p5 = scmp.lt.s32.totalorder %s757_s10, %s757_s10 }
   0xd   :  { %p764_p6 = por %p763_p5, %p762_p4 }
   0xf   :  { %p765_p7 = pnand %p764_p6, %p758_p3 }
  0x11   :  { %768 = shalt.err (!%p765_p7)
}
  0x12   :  { %s844_s11 = smov 64   ;;  %s845_s12 = smov 4  }
  0x13   :  { %30 = dma.hbm_to_vmem [thread:$0]  %s1005_s1, 1280, %s25_s25, [#allocation3], %s844_s11, %s844_s11, %s845_s12  }
  0x14   :  { %s846_s15 = smov [#allocation5]   ;;  %s769_s19 = scalar_lea.hbm %s1006_s2, 16 }
  0x15   :  { %s37_s16 = sshll.u32 %s846_s15, 4  ;;  %p770_p8 = scmp.ne.s32.totalorder %s1006_s2, %s769_s19  ;;  %s38_s16 = int_to_ptr.vmem [resolvable:$true] %s37_s16 }
  0x16   :  { %p773_p9 = scmp.lt.u32.totalorder %s769_s19, %s1006_s2 }
  0x18   :  { %p775_p10 = pnand %p773_p9, %p770_p8 }
  0x1a   :  { %778 = shalt.err (!%p775_p10)
}
  0x1b   :  { %s779_s24 = scalar_lea.vmem %s38_s16, 16  ;;  %s783_s1 = scalar_lea.vmem %s38_s16, 32 }
  0x1c   :  { %p780_p11 = scmp.ne.s32.totalorder %s38_s16, %s779_s24  ;;  %p784_p12 = scmp.lt.s32.totalorder %s38_s16, %s38_s16 }
  0x1d   :  { %p785_p13 = scmp.lt.s32.totalorder %s783_s1, %s779_s24 }
  0x1f   :  { %p786_p0 = por %p785_p13, %p784_p12 }
  0x21   :  { %p787_p1 = pnand %p786_p0, %p780_p11 }
  0x23   :  { %790 = shalt.err (!%p787_p1)
}
  0x24   :  { %40 = dma.hbm_to_vmem [thread:$0]  %s1006_s2, 16, %s38_s16, [#allocation6]  }
  0x25   :  { %835 = dma.done.wait [#allocation3], 1280  }
  0x26   :  { %836 = vsyncadd [#allocation3], 4294966016 }
  0x27   :  { %837 = dma.done.wait [#allocation6], 16  }
  0x28   :  { %838 = vsyncadd [#allocation6], 4294967280  ;;  %v728_v0 = vld [vmem:[#allocation2 + $0x10] sm:$0xff]   ;;  %v729_v1 = vld [vmem:[#allocation2] sm:$0xff]   ;;  %vm89_vm0 = vcmask 261120   ;;  %v847_v13 = vmov 0.0   ;;  %v149_v16 = vlaneseq }
  0x29   :  { %670 = vmatprep.subr.bf16.mxu0 %v728_v0  ;;  %v730_v2 = vld [vmem:[#allocation2 + $0x18] sm:$0xff]   ;;  %678 = vmatprep.subr.bf16.mxu1 %v729_v1  ;;  %v731_v3 = vld [vmem:[#allocation2 + $0x8] sm:$0xff]   ;;  %v732_v4 = vld [vmem:[%s1004_s0] sm:$0xff]   ;;  %vm848_vm1 = vmmov 0   ;;  %vm460_vm6 = vcmask 392192   ;;  %vm510_vm7 = vcmask 1041409  }
  0x2a   :  { %671 = vmatpush3.bf16.msra.mxu0 %v728_v0  ;;  %679 = vmatpush3.bf16.msra.mxu1 %v729_v1  ;;  %v733_v5 = vld [vmem:[%s1004_s0 + $0x8] sm:$0xff]   ;;  %v734_v6 = vld [vmem:[#allocation2 + $0x20] sm:$0xff]   ;;  %v735_v7 = vld [vmem:[#allocation2 + $0x30] sm:$0xff]   ;;  %v940_v17 = vshrl.u32 %v149_v16, 7  ;;  %vm574_vm8 = vcmask 9216  }
  0x2b   :  { %672 = vmatprep.subr.bf16.mxu0 %v730_v2  ;;  %680 = vmatprep.subr.bf16.mxu1 %v731_v3  ;;  %v736_v8 = vld [vmem:[#allocation2 + $0x28] sm:$0xff]   ;;  %v737_v9 = vld [vmem:[#allocation2 + $0x38] sm:$0xff]   ;;  %v738_v10 = vld [vmem:[#allocation2 + $0x40] sm:$0xff]  }
  0x2c   :  { %674 = vmatprep.mubr.msk.bf16.mxu0 %vm89_vm0, %v732_v4  ;;  %682 = vmatprep.mubr.msk.bf16.mxu1 %vm89_vm0, %v732_v4  ;;  %v739_v11 = vld [vmem:[#allocation2 + $0x48] sm:$0xff]   ;;  %v740_v12 = vld [vmem:[%s1008_s4] sm:$0xff]   ;;  %v742_v15 = vld [vmem:[%s1008_s4 + $0x10] sm:$0xff]   ;;  %vm151_vm2 = vcmp.lt.s32.totalorder %v940_v17, 7  ;;  %vm287_vm3 = vcmp.lt.s32.totalorder %v940_v17, 6  ;;  %vm366_vm4 = vcmp.lt.s32.totalorder %v940_v17, 5 }
  0x2d   :  { %v741_v14 = vld [vmem:[%s1008_s4 + $0x8] sm:$0xff]   ;;  %vm445_vm5 = vcmp.lt.s32.totalorder %v940_v17, 4  ;;  %v454_v16 = vld [vmem:[%s1007_s3] sm:$0xff] }
  0x2e   :  { %673 = vmatpush3.bf16.msra.mxu0 %v730_v2  ;;  %681 = vmatpush3.bf16.msra.mxu1 %v731_v3 }
  0x2f   :  { %686 = vmatprep.subr.bf16.mxu0 %v734_v6  ;;  %694 = vmatprep.subr.bf16.mxu1 %v735_v7 }
  0x31   :  { %675 = vmatmul.mubr.msk.bf16.vlgmr.msra.gmra.mrb[0].mxu0 %vm89_vm0, %v733_v5  ;;  %683 = vmatmul.mubr.msk.bf16.vlgmr.msra.gmra.mrb[0].mxu1 %vm89_vm0, %v733_v5 }
  0x32   :  { %687 = vmatpush3.bf16.msra.mxu0 %v734_v6  ;;  %695 = vmatpush3.bf16.msra.mxu1 %v735_v7 }
  0x33   :  { %688 = vmatprep.subr.bf16.mxu0 %v736_v8  ;;  %696 = vmatprep.subr.bf16.mxu1 %v737_v9 }
  0x34   :  { %690 = vmatprep.mubr.msk.bf16.mxu0 %vm89_vm0, %v732_v4  ;;  %698 = vmatprep.mubr.msk.bf16.mxu1 %vm89_vm0, %v732_v4 }
  0x36   :  { %689 = vmatpush3.bf16.msra.mxu0 %v736_v8  ;;  %697 = vmatpush3.bf16.msra.mxu1 %v737_v9 }
  0x37   :  { %702 = vmatprep.subr.bf16.mxu0 %v738_v10  ;;  %710 = vmatprep.subr.bf16.mxu1 %v847_v13 }
  0x39   :  { %691 = vmatmul.mubr.msk.bf16.vlgmr.msra.gmra.mrb[4].mxu0 %vm89_vm0, %v733_v5  ;;  %699 = vmatmul.mubr.msk.bf16.vlgmr.msra.gmra.mrb[4].mxu1 %vm89_vm0, %v733_v5 }
  0x3a   :  { %703 = vmatpush3.bf16.msra.mxu0 %v738_v10  ;;  %706 = vmatprep.mubr.msk.bf16.mxu0 %vm89_vm0, %v732_v4 }
  0x3b   :  { %704 = vmatprep.subr.bf16.mxu0 %v739_v11  ;;  %716 = vmatprep.mubr.msk.bf16.mxu1 %vm848_vm1, %v847_v13 }
  0x3c   :  { %711 = vmatpush3.bf16.msra.mxu1 %v740_v12 }
  0x3d   :  { %712 = vmatprep.subr.bf16.mxu1 %v847_v13 }
  0x3e   :  { %705 = vmatpush3.bf16.msra.mxu0 %v739_v11 }
  0x40   :  { %713 = vmatpush3.bf16.msra.mxu1 %v741_v14 }
  0x41   :  { %707 = vmatmul.mubr.msk.bf16.vlgmr.msra.gmra.mrb[8].mxu0 %vm89_vm0, %v733_v5  ;;  %714 = vmatprep.subr.bf16.mxu1 %v847_v13 }
  0x44   :  { %715 = vmatpush3.bf16.msra.mxu1 %v742_v15 }
 0x104   :  { %v676_v18 = vpop.f32.mrb[0].mxu0  ;;  %v684_v20 = vpop.f32.mrb[0].mxu1 }
 0x105   :  { %v130_v19 = vpop.f32.mrb[1].mxu0  ;;  %v202_v23 = vpop.f32.mrb[1].mxu1  ;;  %v147_v24 = vrot.slane %v676_v18, 1  ;;  %v455_v18 = vld [vmem:[%s1007_s3 + $0x8] sm:$0xff] }
 0x106   :  { %v145_v21 = vrot.slane %v130_v19, 1  ;;  %v677_v22 = vpop.f32.mrb[2].mxu0  ;;  %v685_v27 = vpop.f32.mrb[2].mxu1 }
 0x107   :  { %v148_v25 = vrot.slane %v677_v22, 1  ;;  %v133_v26 = vpop.f32.mrb[3].mxu0  ;;  %v205_v29 = vpop.f32.mrb[3].mxu1 }
 0x108   :  { %v146_v28 = vrot.slane %v133_v26, 1 }
 0x109   :  { %v152_v30 = vsel %vm151_vm2, %v147_v24, %v148_v25  ;;  %v155_v31 = vsel %vm151_vm2, %v148_v25, %v145_v21 }
 0x10a   :  { %v211_v32 = vadd.f32 %v684_v20, %v152_v30  ;;  %v154_v33 = vsel %vm151_vm2, %v145_v21, %v146_v28  ;;  %v214_v34 = vadd.f32 %v685_v27, %v155_v31  ;;  %v153_v35 = vsel %vm151_vm2, %v146_v28, %v147_v24 }
 0x10b   :  { %v203_v36 = vadd.f32 %v202_v23, %v154_v33  ;;  %v206_v37 = vadd.f32 %v205_v29, %v153_v35 }
 0x10c   :  { %v692_v38 = vpop.f32.mrb[4].mxu0  ;;  %v700_v40 = vpop.f32.mrb[4].mxu1 }
 0x10d   :  { %v268_v39 = vpop.f32.mrb[5].mxu0  ;;  %v347_v43 = vpop.f32.mrb[5].mxu1  ;;  %v285_v44 = vrot.slane %v692_v38, 2  ;;  %v364_v46 = vrot.slane %v700_v40, 3 }
 0x10e   :  { %v283_v41 = vrot.slane %v268_v39, 2  ;;  %v693_v42 = vpop.f32.mrb[6].mxu0  ;;  %v362_v48 = vrot.slane %v347_v43, 3  ;;  %v701_v49 = vpop.f32.mrb[6].mxu1 }
 0x10f   :  { %v286_v45 = vrot.slane %v693_v42, 2  ;;  %v271_v47 = vpop.f32.mrb[7].mxu0  ;;  %v365_v51 = vrot.slane %v701_v49, 3  ;;  %v350_v52 = vpop.f32.mrb[7].mxu1 }
 0x110   :  { %v284_v50 = vrot.slane %v271_v47, 2  ;;  %v363_v55 = vrot.slane %v350_v52, 3 }
 0x111   :  { %v288_v53 = vsel %vm287_vm3, %v285_v44, %v286_v45  ;;  %v291_v54 = vsel %vm287_vm3, %v286_v45, %v283_v41  ;;  %v367_v62 = vsel %vm366_vm4, %v364_v46, %v365_v51  ;;  %v370_v63 = vsel %vm366_vm4, %v365_v51, %v362_v48 }
 0x112   :  { %v294_v56 = vadd.f32 %v288_v53, %v211_v32  ;;  %v295_v57 = vadd.f32 %v291_v54, %v214_v34  ;;  %v289_v58 = vsel %vm287_vm3, %v284_v50, %v285_v44  ;;  %v290_v59 = vsel %vm287_vm3, %v283_v41, %v284_v50  ;;  %v640_v44 = vld [vmem:[#allocation5] ss:$0 sm:$0xff] }
 0x113   :  { %v292_v60 = vadd.f32 %v290_v59, %v203_v36  ;;  %v293_v61 = vadd.f32 %v289_v58, %v206_v37  ;;  %v368_v2 = vsel %vm366_vm4, %v363_v55, %v364_v46  ;;  %v369_v3 = vsel %vm366_vm4, %v362_v48, %v363_v55  ;;  %v641_v58 = vld [vmem:[%s1009_s5] ss:$0 sm:$0xff]  ;;  %s849_s5 = smov [#allocation7]  }
 0x114   :  { %v373_v0 = vadd.f32 %v367_v62, %v294_v56  ;;  %v374_v1 = vadd.f32 %v370_v63, %v295_v57  ;;  %v708_v4 = vpop.f32.mrb[8].mxu0  ;;  %s594_s16 = sshll.u32 %s849_s5, 4  ;;  %s595_s16 = int_to_ptr.vmem [resolvable:$true] %s594_s16 }
 0x115   :  { %v371_v5 = vadd.f32 %v369_v3, %v292_v60  ;;  %v372_v6 = vadd.f32 %v368_v2, %v293_v61  ;;  %v426_v7 = vpop.f32.mrb[9].mxu0  ;;  %v443_v10 = vrot.slane %v708_v4, 4  ;;  %s791_s17 = scalar_lea.vmem %s595_s16, 32  ;;  %p796_p3 = scmp.lt.s32.totalorder %s595_s16, %s595_s16 }
 0x116   :  { %v441_v8 = vrot.slane %v426_v7, 4  ;;  %v709_v9 = vpop.f32.mrb[10].mxu0  ;;  %p792_p2 = scmp.ne.s32.totalorder %s595_s16, %s791_s17  ;;  %p797_p4 = scmp.lt.s32.totalorder %s791_s17, %s791_s17 }
 0x117   :  { %v444_v11 = vrot.slane %v709_v9, 4  ;;  %v429_v12 = vpop.f32.mrb[11].mxu0 }
 0x118   :  { %v442_v13 = vrot.slane %v429_v12, 4  ;;  %p798_p5 = por %p797_p4, %p796_p3 }
 0x119   :  { %v446_v14 = vsel %vm445_vm5, %v443_v10, %v444_v11  ;;  %v449_v15 = vsel %vm445_vm5, %v444_v11, %v441_v8 }
 0x11a   :  { %v452_v19 = vadd.f32 %v446_v14, %v373_v0  ;;  %v453_v20 = vadd.f32 %v449_v15, %v374_v1  ;;  %v447_v21 = vsel %vm445_vm5, %v442_v13, %v443_v10  ;;  %v448_v22 = vsel %vm445_vm5, %v441_v8, %v442_v13  ;;  %p799_p6 = pnand %p798_p5, %p792_p2 }
 0x11b   :  { %v450_v23 = vadd.f32 %v448_v22, %v371_v5  ;;  %v451_v17 = vadd.f32 %v447_v21, %v372_v6 }
 0x11c   :  { %v458_v24 = vadd.f32 %v454_v16, %v452_v19  ;;  %v459_v25 = vadd.f32 %v455_v18, %v453_v20 }
 0x11d   :  { %v456_v26 = vadd.f32 %v454_v16, %v450_v23  ;;  %v457_v27 = vadd.f32 %v455_v18, %v451_v17 }
 0x11e   :  { %v470_v28 = vsel %vm460_vm6, %v458_v24, -inf  ;;  %v471_v29 = vsel %vm460_vm6, %v459_v25, -inf }
 0x11f   :  { %v461_v30 = vsel %vm460_vm6, %v456_v26, -inf  ;;  %v462_v31 = vsel %vm460_vm6, %v457_v27, -inf  ;;  %v472_v32 = vmax.f32 %v470_v28, %v471_v29 }
 0x120   :  { %v463_v33 = vmax.f32 %v461_v30, %v462_v31 }
 0x121   :  { %v473_v34 = vrot.slane %v472_v32, 4 }
 0x122   :  { %v464_v35 = vrot.slane %v463_v33, 4 }
 0x123   :  { %v474_v36 = vmax.f32 %v472_v32, %v473_v34 }
 0x124   :  { %v465_v37 = vmax.f32 %v463_v33, %v464_v35 }
 0x125   :  { %v475_v38 = vrot.slane %v474_v36, 2 }
 0x126   :  { %v466_v39 = vrot.slane %v465_v37, 2 }
 0x127   :  { %v476_v40 = vmax.f32 %v474_v36, %v475_v38 }
 0x128   :  { %v467_v41 = vmax.f32 %v465_v37, %v466_v39 }
 0x129   :  { %v477_v42 = vrot.slane %v476_v40, 1 }
 0x12a   :  { %v468_v43 = vrot.slane %v467_v41, 1 }
 0x12b   :  { %v478_v45 = vmax.f32 %v476_v40, %v477_v42 }
 0x12c   :  { %v469_v46 = vmax.f32 %v467_v41, %v468_v43 }
 0x12d   :  { %v487_v47 = vadd.f32 %v640_v44, %v478_v45 }
 0x12e   :  { %v486_v48 = vadd.f32 %v640_v44, %v469_v46 }
 0x12f   :  { %v489_v49 = vmax.f32 %v487_v47, 0.0 }
 0x130   :  { %v488_v50 = vmax.f32 %v486_v48, 0.0 }
 0x131   :  { %v491_v51 = vpack.c.bf16 %v489_v49, %v489_v49 }
 0x132   :  { %v490_v52 = vpack.c.bf16 %v488_v50, %v488_v50 }
 0x133   :  { %v508_v53 = vunpack.c.l.b16 %v491_v51 }
 0x134   :  { %v507_v54 = vunpack.c.l.b16 %v490_v52 }
 0x135   :  { %v509_v55 = vrot.slane %v508_v53, 7 }
 0x137   :  { %v511_v56 = vsel %vm510_vm7, %v509_v55, %v507_v54 }
 0x138   :  { %v512_v57 = vpack.c.b16 %v511_v56, %v511_v56 }
 0x13a   :  { %717 = vmatmul.mubr.msk.bf16.vlgmr.msra.gmra.mrb[8].mxu1 %vm460_vm6, %v512_v57 }
 0x20d   :  { %v568_v59 = vpop.f32.mrb[8].mxu1 }
 0x20e   :  { %v569_v60 = vadd.f32 %v641_v58, %v568_v59  ;;  %v718_v61 = vpop.f32.mrb[9].mxu1 }
 0x20f   :  { %v571_v62 = vpop.f32.mrb[10].mxu1 }
 0x210   :  { %v719_v63 = vpop.f32.mrb[11].mxu1  ;;  %v575_v0 = vsel %vm574_vm8, %v569_v60, -inf  ;;  %586 = vst.msk [vmem:[#allocation7] sm:$0x3] %vm574_vm8, %v569_v60 }
 0x211   :  { %576 = vmax.xlane.f32.xlu0 %v575_v0 }
 0x29e   :  { %v577_v1 = vpop.xlane.xlu0 %576 }
 0x29f   :  { %v578_v2 = vsub.f32 %v569_v60, %v577_v1 }
 0x2a1   :  { %v579_v3 = vmul.f32 1.442695, %v578_v2 }
 0x2a3   :  { %743 = vpow2.f32 %v579_v3 }
 0x2ad   :  { %v744_v4 = vpop.eup %743 }
 0x2ae   :  { %v581_v5 = vsel %vm574_vm8, %v744_v4, 0.0 }
 0x2af   :  { %582 = vadd.xlane.f32.xlu0 %v581_v5 }
 0x2b0   :  { %802 = shalt.err (!%p799_p6)
}
 0x2b1   :  { %s803_s20 = scalar_lea.hbm %s1010_s6, 32 }
 0x2b2   :  { %p804_p7 = scmp.ne.s32.totalorder %s1010_s6, %s803_s20  ;;  %p807_p8 = scmp.lt.u32.totalorder %s803_s20, %s1010_s6 }
 0x2b4   :  { %p809_p9 = pnand %p807_p8, %p804_p7 }
 0x2b6   :  { %812 = shalt.err (!%p809_p9)
}
 0x2b7   :  { %597 = dma.vmem_to_hbm [thread:$0]  %s595_s16, 32, %s1010_s6, [#allocation4]  }
 0x2b8   :  { %s850_s26 = smov [#allocation8]  }
 0x2b9   :  { %s604_s27 = sshll.u32 %s850_s26, 4  ;;  %s605_s27 = int_to_ptr.vmem [resolvable:$true] %s604_s27 }
 0x2ba   :  { %s813_s28 = scalar_lea.vmem %s605_s27, 32  ;;  %p818_p11 = scmp.lt.s32.totalorder %s605_s27, %s605_s27 }
 0x2bb   :  { %p814_p10 = scmp.ne.s32.totalorder %s605_s27, %s813_s28  ;;  %p819_p12 = scmp.lt.s32.totalorder %s813_s28, %s813_s28 }
 0x2bd   :  { %p820_p13 = por %p819_p12, %p818_p11 }
 0x2bf   :  { %p821_p0 = pnand %p820_p13, %p814_p10 }
 0x33c   :  { %v583_v6 = vpop.xlane.xlu0 %582 }
 0x33d   :  { %745 = vrcp.f32 %v583_v6 }
 0x347   :  { %v746_v7 = vpop.eup %745 }
 0x348   :  { %v585_v8 = vmul.f32 %v746_v7, %v744_v4 }
 0x34a   :  { %587 = vst.msk [vmem:[#allocation8] sm:$0x3] %vm574_vm8, %v585_v8 }
 0x34b   :  { %824 = shalt.err (!%p821_p0)
}
 0x34c   :  { %s825_s6 = scalar_lea.hbm %s1011_s7, 32 }
 0x34d   :  { %p826_p1 = scmp.ne.s32.totalorder %s1011_s7, %s825_s6  ;;  %p829_p2 = scmp.lt.u32.totalorder %s825_s6, %s1011_s7 }
 0x34f   :  { %p831_p3 = pnand %p829_p2, %p826_p1 }
 0x351   :  { %834 = shalt.err (!%p831_p3)
}
 0x352   :  { %607 = dma.vmem_to_hbm [thread:$0]  %s605_s27, 32, %s1011_s7, [#allocation9]  }
 0x353   :  { %839 = dma.done.wait [#allocation4], 32  }
 0x354   :  { %840 = vsyncadd [#allocation4], 4294967264 }
 0x355   :  { %841 = dma.done.wait [#allocation9], 32  }
 0x356   :  { %842 = vsyncadd [#allocation9], 4294967264 }
 0x357   :  { %614 = vsyncpa [#allocation3], 1 }
 0x358   :  { %615 = vsyncpa [#allocation6], 1 }
 0x359   :  { %616 = vsyncpa [#allocation4], 1 }
 0x35a   :  { %617 = vsyncpa [#allocation9], 1 }

</bundles_post_ra>
